<compile_context>
chip_gen: v6e
topology: v6e:2x2x1
jax: 0.10.0
libtpu: 0.0.40
codegen_flags: <defaults>
</compile_context>

<pallas_src>
import jax
import jax.numpy as jnp
from jax.experimental import pallas as pl
from jax.experimental.pallas import tpu as pltpu

HIDDEN = 64  # matches nn.Linear(..., 64)


def _round_up(x, m):
    return (x + m - 1) // m * m


def _mlp_kernel(obs_ref, w1_ref, b1_ref, w2_ref, b2_ref, w3_ref, b3_ref, out_ref):
    wdt = w2_ref.dtype  # compute dtype of the matmul inputs (f32 or bf16)
    x = obs_ref[...]
    h1 = jnp.dot(x, w1_ref[...], preferred_element_type=jnp.float32) + b1_ref[...]
    h1 = jnp.maximum(h1, 0.0).astype(wdt)
    h2 = jnp.dot(h1, w2_ref[...], preferred_element_type=jnp.float32) + b2_ref[...]
    h2 = jnp.maximum(h2, 0.0).astype(wdt)
    y = jnp.dot(h2, w3_ref[...], preferred_element_type=jnp.float32) + b3_ref[...]
    out_ref[...] = y.astype(out_ref.dtype)


def _choose_tb(B, block_b, min_steps):
    # Large tiles (mem-bound kernel; ~0.35us per grid step overhead) but keep
    # at least `min_steps` steps when B is big enough so v7x's two TCs can
    # split the grid and the DMA pipeline has something to overlap.
    tb = min(block_b, _round_up(pl.cdiv(B, min_steps), 8))
    return max(tb, 8)


def high_level_policy_forward(obs, params, *, block_b=4096, min_steps=8,
                              use_bf16=False):
    """obs: (B, in_dim) float32.  params: pre-transposed (in, out) weights and
    (1, out) biases, all float32 and UNPADDED.  Returns (B, out_dim) float32."""
    B, in_dim = obs.shape
    out_dim = params["w3"].shape[1]

    if use_bf16:
        # bf16 matmul inputs, f32 accumulation / biases / output.
        obs = obs.astype(jnp.bfloat16)
        params = {k: (v.astype(jnp.bfloat16) if k.startswith("w") else v)
                  for k, v in params.items()}

    TB = _choose_tb(B, block_b, min_steps)
    grid = (pl.cdiv(B, TB),)

    # Weights/biases: full-array blocks, constant index_map -> VMEM-resident.
    full = lambda a: pl.BlockSpec(a.shape, lambda i: (0,) * a.ndim)

    return pl.pallas_call(
        _mlp_kernel,
        out_shape=jax.ShapeDtypeStruct((B, out_dim), jnp.float32),
        grid_spec=pltpu.PrefetchScalarGridSpec(
            num_scalar_prefetch=0,
            grid=grid,
            in_specs=[
                pl.BlockSpec((TB, in_dim), lambda i: (i, 0)),
                full(params["w1"]), full(params["b1"]),
                full(params["w2"]), full(params["b2"]),
                full(params["w3"]), full(params["b3"]),
            ],
            out_specs=pl.BlockSpec((TB, out_dim), lambda i: (i, 0)),
        ),
        compiler_params=pltpu.CompilerParams(
            dimension_semantics=("parallel",),
        ),
    )(obs, params["w1"], params["b1"], params["w2"], params["b2"],
      params["w3"], params["b3"])


def init_params(key, in_dim, out_dim, hidden=HIDDEN):
    """Deterministic init mimicking nn.Linear's U(-1/sqrt(fan_in), 1/sqrt(fan_in)).
    Weights stored as (in_features, out_features) = PyTorch weight.T."""
    ks = jax.random.split(key, 6)

    def linear(kw, kb, fan_in, fan_out):
        bound = 1.0 / jnp.sqrt(jnp.float32(fan_in))
        w = jax.random.uniform(kw, (fan_in, fan_out), jnp.float32, -bound, bound)
        b = jax.random.uniform(kb, (1, fan_out), jnp.float32, -bound, bound)
        return w, b

    w1, b1 = linear(ks[0], ks[1], in_dim, hidden)
    w2, b2 = linear(ks[2], ks[3], hidden, hidden)
    w3, b3 = linear(ks[4], ks[5], hidden, out_dim)
    return {"w1": w1, "b1": b1, "w2": w2, "b2": b2, "w3": w3, "b3": b3}


def reference_forward(obs, p):
    h1 = jnp.maximum(obs @ p["w1"] + p["b1"], 0.0)
    h2 = jnp.maximum(h1 @ p["w2"] + p["b2"], 0.0)
    return h2 @ p["w3"] + p["b3"]


if __name__ == "__main__":
    key = jax.random.PRNGKey(0)
    k_obs, k_params = jax.random.split(key)

    # Small shapes consistent with the MLP; B=20 exercises the ragged final
    # batch block (20 % 8 != 0) without any wrapper-side padding.
    B, in_dim, out_dim = 20, 16, 8
    obs = jax.random.normal(k_obs, (B, in_dim), jnp.float32)
    params = init_params(k_params, in_dim, out_dim)

    # f32 path: bit-faithful to the PyTorch f32 reference.
    out = high_level_policy_forward(obs, params)
    out = jax.block_until_ready(out)
    ref = reference_forward(obs, params)
    assert out.shape == (B, out_dim)
    assert jnp.allclose(out, ref, atol=1e-5, rtol=1e-5)

    # Optional bf16-input path (v5e-friendly); f32 accumulation, looser check.
    out_bf16 = jax.block_until_ready(
        high_level_policy_forward(obs, params, use_bf16=True))
    assert out_bf16.shape == (B, out_dim)
    assert bool(jnp.all(jnp.isfinite(out_bf16)))
    assert jnp.allclose(out_bf16, ref, atol=0.2, rtol=0.1)

    print("KERNEL_OK")
</pallas_src>

<mosaic_0001>
module attributes {stable_mosaic.version = 11 : i64} {
  func.func @_mlp_kernel(%arg0: i32, %arg1: memref<8x16xf32, #tpu.memory_space<vmem>>, %arg2: memref<16x64xf32, #tpu.memory_space<vmem>>, %arg3: memref<1x64xf32, #tpu.memory_space<vmem>>, %arg4: memref<64x64xf32, #tpu.memory_space<vmem>>, %arg5: memref<1x64xf32, #tpu.memory_space<vmem>>, %arg6: memref<64x8xf32, #tpu.memory_space<vmem>>, %arg7: memref<1x8xf32, #tpu.memory_space<vmem>>, %arg8: memref<8x8xf32, #tpu.memory_space<vmem>>) attributes {dimension_semantics = [#tpu.dimension_semantics<parallel>], iteration_bounds = array<i64: 3>, scalar_prefetch = 0 : i64, scratch_operands = 0 : i64, tpu.core_type = #tpu.core_type<tc>, window_params = [{transform_indices = @transform_0, window_bounds = array<i64: 8, 16>}, {pipeline_mode = #tpu.pipeline_mode<synchronous>, transform_indices = @transform_1, window_bounds = array<i64: 16, 64>}, {pipeline_mode = #tpu.pipeline_mode<synchronous>, transform_indices = @transform_2, window_bounds = array<i64: 1, 64>}, {pipeline_mode = #tpu.pipeline_mode<synchronous>, transform_indices = @transform_3, window_bounds = array<i64: 64, 64>}, {pipeline_mode = #tpu.pipeline_mode<synchronous>, transform_indices = @transform_4, window_bounds = array<i64: 1, 64>}, {pipeline_mode = #tpu.pipeline_mode<synchronous>, transform_indices = @transform_5, window_bounds = array<i64: 64, 8>}, {pipeline_mode = #tpu.pipeline_mode<synchronous>, transform_indices = @transform_6, window_bounds = array<i64: 1, 8>}, {transform_indices = @transform_7, window_bounds = array<i64: 8, 8>}]} {
    %c0 = arith.constant 0 : index
    %c0_0 = arith.constant 0 : index
    %0 = vector.load %arg1[%c0, %c0_0] : memref<8x16xf32, #tpu.memory_space<vmem>>, vector<8x16xf32>
    %c0_1 = arith.constant 0 : index
    %c0_2 = arith.constant 0 : index
    %1 = vector.load %arg2[%c0_1, %c0_2] : memref<16x64xf32, #tpu.memory_space<vmem>>, vector<16x64xf32>
    %cst = arith.constant dense<0.000000e+00> : vector<8x64xf32>
    %2 = tpu.matmul %0, %1, %cst {dimension_numbers = #tpu.dot_dimension_numbers<[1], [0], [0], [1], [0, 0, 1, 1], [], []>} : vector<8x16xf32>, vector<16x64xf32>, vector<8x64xf32> -> vector<8x64xf32>
    %c0_3 = arith.constant 0 : index
    %c0_4 = arith.constant 0 : index
    %3 = vector.load %arg3[%c0_3, %c0_4] : memref<1x64xf32, #tpu.memory_space<vmem>>, vector<1x64xf32>
    %4 = vector.broadcast %3 : vector<1x64xf32> to vector<8x64xf32>
    %5 = arith.addf %2, %4 : vector<8x64xf32>
    %cst_5 = arith.constant 0.000000e+00 : f32
    %6 = vector.broadcast %cst_5 : f32 to vector<8x64xf32>
    %7 = arith.maximumf %5, %6 : vector<8x64xf32>
    %c0_6 = arith.constant 0 : index
    %c0_7 = arith.constant 0 : index
    %8 = vector.load %arg4[%c0_6, %c0_7] : memref<64x64xf32, #tpu.memory_space<vmem>>, vector<64x64xf32>
    %cst_8 = arith.constant dense<0.000000e+00> : vector<8x64xf32>
    %9 = tpu.matmul %7, %8, %cst_8 {dimension_numbers = #tpu.dot_dimension_numbers<[1], [0], [0], [1], [0, 0, 1, 1], [], []>} : vector<8x64xf32>, vector<64x64xf32>, vector<8x64xf32> -> vector<8x64xf32>
    %c0_9 = arith.constant 0 : index
    %c0_10 = arith.constant 0 : index
    %10 = vector.load %arg5[%c0_9, %c0_10] : memref<1x64xf32, #tpu.memory_space<vmem>>, vector<1x64xf32>
    %11 = vector.broadcast %10 : vector<1x64xf32> to vector<8x64xf32>
    %12 = arith.addf %9, %11 : vector<8x64xf32>
    %cst_11 = arith.constant 0.000000e+00 : f32
    %13 = vector.broadcast %cst_11 : f32 to vector<8x64xf32>
    %14 = arith.maximumf %12, %13 : vector<8x64xf32>
    %c0_12 = arith.constant 0 : index
    %c0_13 = arith.constant 0 : index
    %15 = vector.load %arg6[%c0_12, %c0_13] : memref<64x8xf32, #tpu.memory_space<vmem>>, vector<64x8xf32>
    %cst_14 = arith.constant dense<0.000000e+00> : vector<8x8xf32>
    %16 = tpu.matmul %14, %15, %cst_14 {dimension_numbers = #tpu.dot_dimension_numbers<[1], [0], [0], [1], [0, 0, 1, 1], [], []>} : vector<8x64xf32>, vector<64x8xf32>, vector<8x8xf32> -> vector<8x8xf32>
    %c0_15 = arith.constant 0 : index
    %c0_16 = arith.constant 0 : index
    %17 = vector.load %arg7[%c0_15, %c0_16] : memref<1x8xf32, #tpu.memory_space<vmem>>, vector<1x8xf32>
    %18 = vector.broadcast %17 : vector<1x8xf32> to vector<8x8xf32>
    %19 = arith.addf %16, %18 : vector<8x8xf32>
    %c0_17 = arith.constant 0 : index
    %c0_18 = arith.constant 0 : index
    %20 = vector.load %arg8[%c0_17, %c0_18] : memref<8x8xf32, #tpu.memory_space<vmem>>, vector<8x8xf32>
    tpu.vector_store %arg8[%c0_17, %c0_18], %19 {strides = array<i32>} : memref<8x8xf32, #tpu.memory_space<vmem>>, vector<8x8xf32>,
    return
  }
  func.func @transform_0(%arg0: i32) -> (i32, i32) {
    %c0_i32 = arith.constant 0 : i32
    %c0_i32_0 = arith.constant 0 : i32
    return %arg0, %c0_i32 : i32, i32
  }
  func.func @transform_1(%arg0: i32) -> (i32, i32) {
    %c0_i32 = arith.constant 0 : i32
    %c0_i32_0 = arith.constant 0 : i32
    %c0_i32_1 = arith.constant 0 : i32
    return %c0_i32, %c0_i32_0 : i32, i32
  }
  func.func @transform_2(%arg0: i32) -> (i32, i32) {
    %c0_i32 = arith.constant 0 : i32
    %c0_i32_0 = arith.constant 0 : i32
    %c0_i32_1 = arith.constant 0 : i32
    return %c0_i32, %c0_i32_0 : i32, i32
  }
  func.func @transform_3(%arg0: i32) -> (i32, i32) {
    %c0_i32 = arith.constant 0 : i32
    %c0_i32_0 = arith.constant 0 : i32
    %c0_i32_1 = arith.constant 0 : i32
    return %c0_i32, %c0_i32_0 : i32, i32
  }
  func.func @transform_4(%arg0: i32) -> (i32, i32) {
    %c0_i32 = arith.constant 0 : i32
    %c0_i32_0 = arith.constant 0 : i32
    %c0_i32_1 = arith.constant 0 : i32
    return %c0_i32, %c0_i32_0 : i32, i32
  }
  func.func @transform_5(%arg0: i32) -> (i32, i32) {
    %c0_i32 = arith.constant 0 : i32
    %c0_i32_0 = arith.constant 0 : i32
    %c0_i32_1 = arith.constant 0 : i32
    return %c0_i32, %c0_i32_0 : i32, i32
  }
  func.func @transform_6(%arg0: i32) -> (i32, i32) {
    %c0_i32 = arith.constant 0 : i32
    %c0_i32_0 = arith.constant 0 : i32
    %c0_i32_1 = arith.constant 0 : i32
    return %c0_i32, %c0_i32_0 : i32, i32
  }
  func.func @transform_7(%arg0: i32) -> (i32, i32) {
    %c0_i32 = arith.constant 0 : i32
    %c0_i32_0 = arith.constant 0 : i32
    return %arg0, %c0_i32 : i32, i32
  }
}

</mosaic_0001>

<bundles_post_ra>
// kernel: tpu_custom_call.1
= control target key start
LH: loop header
LB: loop body
LE: loop exit
PB: predicated region body
PF: predicated region fallthrough
CT: control target
= control target key end

     0   :  { %s733_s24 = smov 0   ;;  %s846_s0 = inlined_call_operand.vmem [shape: f32[20,16], index: 0, kind: input, shape index: {}]   ;;  %s847_s1 = inlined_call_operand.vmem [shape: f32[16,64], index: 1, kind: input, shape index: {}]   ;;  %s848_s2 = inlined_call_operand.vmem [shape: f32[1,64], index: 2, kind: input, shape index: {}]   ;;  %s849_s3 = inlined_call_operand.vmem [shape: f32[64,64], index: 3, kind: input, shape index: {}]   ;;  %s850_s4 = inlined_call_operand.vmem [shape: f32[1,64], index: 4, kind: input, shape index: {}]   ;;  %s851_s5 = inlined_call_operand.vmem [shape: f32[64,8], index: 5, kind: input, shape index: {}]   ;;  %s852_s6 = inlined_call_operand.vmem [shape: f32[1,8], index: 6, kind: input, shape index: {}]   ;;  %s853_s7 = inlined_call_operand.vmem [shape: f32[20,8], index: 7, kind: output, shape index: {}]  }
   0x1 LB: > { %s592_s25 = sadd.s32 4294967295, %s689_s24   ;;  %p596_p0 = scmp.ge.s32.totalorder %s689_s24, 1  ;;  %s689_s24 = sphi %s733_s24, %s17_s24  }
   0x2   : > { %p236_p1 = scmp.lt.s32.totalorder %s689_s24, 4 }
   0x4   : > { %p237_p2 = pnand %p596_p0, %p236_p1 }
   0x5   : > { %p266_p3 = scmp.lt.s32.totalorder (!%p237_p2), %s592_s25, 2 }
   0x6   : > { %240 = sbr.rel (%p237_p2) target bundleno = 608 (0x260), region = 48 }
   0xb   : > { %v276_v0 = vld [vmem:[%s847_s1 + $0x8] sm:$0xff]  ;;  %v691_v1 = vmov 0.0   ;;  %v275_v2 = vld [vmem:[%s847_s1] sm:$0xff]  ;;  %vm692_vm0 = vmmov 0   ;;  %v366_v3 = vld [vmem:[%s849_s3 + $0x38] sm:$0xff]  ;;  %s855_s25 = smov (!%p266_p3, %s592_s25), 2 }
   0xc   : > { %628 = vmatprep.subr.mxu0 %v691_v1  ;;  %632 = vmatprep.mubr.msk.f32.mxu0 %vm692_vm0, %v691_v1  ;;  %v365_v4 = vld [vmem:[%s849_s3 + $0x30] sm:$0xff]  ;;  %s597_s11 = sshll.u32 %s855_s25, 3  ;;  %vm284_vm1 = vcmask 130048   ;;  %v364_v5 = vld [vmem:[%s849_s3 + $0x28] sm:$0xff]  ;;  %v363_v7 = vld [vmem:[%s849_s3 + $0x20] sm:$0xff]  ;;  %vm374_vm2 = vcmask 523264  }
   0xd   : > { %629 = vmatpush3.msra.mxu0 %v276_v0  ;;  %635 = vmatprep.subr.mxu1 %v691_v1  ;;  %s269_s16 = scalar_lea.vmem %s846_s0, %s597_s11  ;;  %v362_v8 = vld [vmem:[%s849_s3 + $0x18] sm:$0xff]  ;;  %v361_v9 = vld [vmem:[%s849_s3 + $0x10] sm:$0xff]  ;;  %v360_v10 = vld [vmem:[%s849_s3 + $0x8] sm:$0xff]  ;;  %s273_s10 = scalar_lea.vmem %s853_s7, %s597_s11  ;;  %vm537_vm3 = vcmask 64512  }
   0xe   : > { %630 = vmatprep.subr.mxu0 %v691_v1  ;;  %636 = vmatpush3.msra.mxu1 %v366_v3  ;;  %v274_v6 = vld [vmem:[%s269_s16] sm:$0xff]  ;;  %v456_v12 = vld [vmem:[%s851_s5 + $0x38] sm:$0xff]  ;;  %v455_v13 = vld [vmem:[%s851_s5 + $0x30] sm:$0xff] }
   0xf   : > { %631 = vmatpush3.msra.mxu0 %v275_v2  ;;  %637 = vmatprep.subr.mxu1 %v691_v1  ;;  %v359_v11 = vld [vmem:[%s849_s3] sm:$0xff]  ;;  %v454_v14 = vld [vmem:[%s851_s5 + $0x28] sm:$0xff]  ;;  %v452_v16 = vld [vmem:[%s851_s5 + $0x18] sm:$0xff] }
  0x10   : > { %638 = vmatpush3.msra.mxu1 %v365_v4  ;;  %651 = vmatprep.mubr.msk.f32.mxu1 %vm692_vm0, %v691_v1  ;;  %v453_v15 = vld [vmem:[%s851_s5 + $0x20] sm:$0xff]  ;;  %v451_v22 = vld [vmem:[%s851_s5 + $0x10] sm:$0xff]  ;;  %v450_v23 = vld [vmem:[%s851_s5 + $0x8] sm:$0xff] }
  0x11   : > { %639 = vmatprep.subr.mxu1 %v691_v1  ;;  %654 = vmatprep.subr.mxu0 %v691_v1  ;;  %v599_v17 = vld [vmem:[%s848_s2] ss:$0 sm:$0xff] }
  0x12   : > { %633 = vmatmul.mubr.msk.f32.vlgmr.msra.gmra.mxu0 %vm284_vm1, %v274_v6  ;;  %640 = vmatpush3.msra.mxu1 %v364_v5  ;;  %v449_v24 = vld [vmem:[%s851_s5] sm:$0xff] }
  0x13   : > { %641 = vmatprep.subr.mxu1 %v691_v1  ;;  %670 = vmatprep.mubr.msk.f32.mxu0 %vm692_vm0, %v691_v1  ;;  %v601_v25 = vld [vmem:[%s850_s4] ss:$0 sm:$0xff] }
  0x14   : > { %642 = vmatpush3.msra.mxu1 %v363_v7  ;;  %655 = vmatpush3.msra.mxu0 %v456_v12  ;;  %v603_v30 = vld [vmem:[%s852_s6] ss:$0 sm:$0xff] }
  0x15   : > { %643 = vmatprep.subr.mxu1 %v691_v1  ;;  %656 = vmatprep.subr.mxu0 %v691_v1 }
  0x16   : > { %644 = vmatpush3.msra.mxu1 %v362_v8  ;;  %657 = vmatpush3.msra.mxu0 %v455_v13 }
  0x17   : > { %645 = vmatprep.subr.mxu1 %v691_v1  ;;  %658 = vmatprep.subr.mxu0 %v691_v1 }
  0x18   : > { %646 = vmatpush3.msra.mxu1 %v361_v9  ;;  %659 = vmatpush3.msra.mxu0 %v454_v14 }
  0x19   : > { %647 = vmatprep.subr.mxu1 %v691_v1  ;;  %660 = vmatprep.subr.mxu0 %v691_v1 }
  0x1a   : > { %648 = vmatpush3.msra.mxu1 %v360_v10  ;;  %661 = vmatpush3.msra.mxu0 %v453_v15 }
  0x1b   : > { %649 = vmatprep.subr.mxu1 %v691_v1  ;;  %662 = vmatprep.subr.mxu0 %v691_v1 }
  0x1c   : > { %650 = vmatpush3.msra.mxu1 %v359_v11  ;;  %663 = vmatpush3.msra.mxu0 %v452_v16 }
  0x1d   : > { %664 = vmatprep.subr.mxu0 %v691_v1 }
  0x1e   : > { %665 = vmatpush3.msra.mxu0 %v451_v22 }
  0x1f   : > { %666 = vmatprep.subr.mxu0 %v691_v1 }
  0x20   : > { %667 = vmatpush3.msra.mxu0 %v450_v23 }
  0x21   : > { %668 = vmatprep.subr.mxu0 %v691_v1 }
  0x22   : > { %669 = vmatpush3.msra.mxu0 %v449_v24 }
  0xd2   : > { %v354_v18 = vpop.f32.mrf.mxu0 }
  0xd3   : > { %v355_v19 = vadd.f32 %v599_v17, %v354_v18 }
  0xd4   : > { %v634_v20 = vpop.f32.mrf.mxu0 }
  0xd5   : > { %v358_v21 = vmax.f32 %v355_v19, 0.0 }
  0xd7   : > { %652 = vmatmul.mubr.msk.f32.vlgmr.msra.gmra.mxu1 %vm374_vm2, %v358_v21 }
 0x197   : > { %v444_v26 = vpop.f32.mrf.mxu1 }
 0x198   : > { %v445_v27 = vadd.f32 %v601_v25, %v444_v26 }
 0x199   : > { %v653_v28 = vpop.f32.mrf.mxu1 }
 0x19a   : > { %v448_v29 = vmax.f32 %v445_v27, 0.0 }
 0x19c   : > { %671 = vmatmul.mubr.msk.f32.vlgmr.msra.gmra.mxu0 %vm374_vm2, %v448_v29 }
 0x25c   : > { %v533_v31 = vpop.f32.mrf.mxu0 }
 0x25d   : > { %v534_v32 = vadd.f32 %v603_v30, %v533_v31 }
 0x25e   : > { %v672_v33 = vpop.f32.mrf.mxu0 }
 0x25f   : > { %538 = vst.msk [vmem:[%s273_s10] sm:$0xff] %vm537_vm3, %v534_v32 }
 0x260 PF: > { %s17_s24 = sadd.s32 1, %s689_s24  }
 0x261   : > { %p14_p4 = scmp.ge.s32.totalorder %s17_s24, 5  }
 0x263   :  { %16 = sbr.rel (!%p14_p4) target bundleno = 1 (0x1), region = 78 }

</bundles_post_ra>
